<compile_context>
chip_gen: v6e
topology: v6e:2x2x1
jax: 0.10.0
libtpu: 0.0.40
codegen_flags: <defaults>
</compile_context>

<pallas_src>
import jax
import jax.numpy as jnp
from jax.experimental import pallas as pl
from jax.experimental.pallas import tpu as pltpu


def _wavenn_linear_kernel(x_ref, wb_ref, o_ref):
    """o[n, m] = w[n] * x[m] + b[n]   (pure VPU broadcast multiply-add).

    x_ref : (1, TM)  f32   -- input presented lane-dense
    wb_ref: (N, 2)   f32   -- column 0 = weight, column 1 = bias
    o_ref : (N, TM)  f32   -- transposed output block (lane-dense stores)
    """
    x = x_ref[...]             # (1, TM)
    w = wb_ref[:, 0:1]         # (N, 1)
    b = wb_ref[:, 1:2]         # (N, 1)
    o_ref[...] = (w * x + b).astype(o_ref.dtype)


def linear_pallas(x, w, b, *, tm=32768, gridless_max_m=262144):
    """y = x @ w.T + b for x: (M, 1), w: (N, 1), b: (N,).  Returns (M, N)."""
    M, K = x.shape
    assert K == 1, "WaveNN linear has in_features == 1"
    N = w.shape[0]

    x_row = x.reshape(1, M).astype(jnp.float32)              # free layout change
    wb = jnp.concatenate(
        [w.reshape(N, 1), b.reshape(N, 1)], axis=1
    ).astype(jnp.float32)                                     # (N, 2)

    if M <= gridless_max_m:
        # Single shot: no grid, no software-pipeline machinery, full arrays in VMEM.
        yt = pl.pallas_call(
            _wavenn_linear_kernel,
            out_shape=jax.ShapeDtypeStruct((N, M), jnp.float32),
            in_specs=[
                pl.BlockSpec(memory_space=pltpu.MemorySpace.VMEM),
                pl.BlockSpec(memory_space=pltpu.MemorySpace.VMEM),
            ],
            out_specs=pl.BlockSpec(memory_space=pltpu.MemorySpace.VMEM),
        )(x_row, wb)
        return yt.T.astype(x.dtype)

    # Large-M path: tile only over M (the lane axis); wb stays resident.
    m_pad = pl.cdiv(M, tm) * tm
    if m_pad != M:
        x_row = jnp.pad(x_row, ((0, 0), (0, m_pad - M)))
    yt = pl.pallas_call(
        _wavenn_linear_kernel,
        out_shape=jax.ShapeDtypeStruct((N, m_pad), jnp.float32),
        grid=(m_pad // tm,),
        in_specs=[
            pl.BlockSpec((1, tm), lambda i: (0, i)),
            pl.BlockSpec((N, 2), lambda i: (0, 0)),
        ],
        out_specs=pl.BlockSpec((N, tm), lambda i: (0, i)),
        compiler_params=pltpu.CompilerParams(
            dimension_semantics=("parallel",)
        ),
    )(x_row, wb)
    return yt[:, :M].T.astype(x.dtype)


class ModelPallas:
    """Pallas equivalent of Models/WaveNN.Model.forward: nn.Linear(1, 3)(x)."""

    def __init__(self, key):
        kw, kb = jax.random.split(key)
        bound = 1.0  # 1/sqrt(in_features) with in_features == 1
        self.weight = jax.random.uniform(
            kw, (3, 1), dtype=jnp.float32, minval=-bound, maxval=bound
        )
        self.bias = jax.random.uniform(
            kb, (3,), dtype=jnp.float32, minval=-bound, maxval=bound
        )

    def __call__(self, x, **kwargs):
        return linear_pallas(x, self.weight, self.bias, **kwargs)


if __name__ == "__main__":
    key = jax.random.PRNGKey(0)
    k_param, k_x, k_big = jax.random.split(key, 3)

    model = ModelPallas(k_param)

    # Small input consistent with nn.Linear(1, 3): batch=8, in_features=1.
    x = jax.random.normal(k_x, (8, 1), dtype=jnp.float32)
    y = jax.block_until_ready(model(x))
    y_ref = x @ model.weight.T + model.bias
    assert y.shape == (8, 3)
    assert jnp.allclose(y, y_ref, atol=1e-5, rtol=1e-5)

    # Also exercise the tiled (large-M, megacore-parallel) path once by forcing
    # the grid path with a small threshold / tile (including a ragged last tile).
    x_big = jax.random.normal(k_big, (5000, 1), dtype=jnp.float32)
    y_big = jax.block_until_ready(model(x_big, tm=1024, gridless_max_m=1024))
    y_big_ref = x_big @ model.weight.T + model.bias
    assert y_big.shape == (5000, 3)
    assert jnp.allclose(y_big, y_big_ref, atol=1e-5, rtol=1e-5)

    print("KERNEL_OK")
</pallas_src>

<mosaic_0001>
module attributes {stable_mosaic.version = 11 : i64} {
  func.func @_wavenn_linear_kernel(%arg0: memref<1x8xf32, #tpu.memory_space<vmem>>, %arg1: memref<3x2xf32, #tpu.memory_space<vmem>>, %arg2: memref<3x8xf32, #tpu.memory_space<vmem>>) attributes {dimension_semantics = [], scalar_prefetch = 0 : i64, scratch_operands = 0 : i64, tpu.core_type = #tpu.core_type<tc>} {
    %c0 = arith.constant 0 : index
    %c0_0 = arith.constant 0 : index
    %0 = vector.load %arg0[%c0, %c0_0] : memref<1x8xf32, #tpu.memory_space<vmem>>, vector<1x8xf32>
    %c0_1 = arith.constant 0 : index
    %c0_2 = arith.constant 0 : index
    %1 = vector.load %arg1[%c0_1, %c0_2] : memref<3x2xf32, #tpu.memory_space<vmem>>, vector<3x1xf32>
    %c0_3 = arith.constant 0 : index
    %c1 = arith.constant 1 : index
    %2 = vector.load %arg1[%c0_3, %c1] : memref<3x2xf32, #tpu.memory_space<vmem>>, vector<3x1xf32>
    %3 = vector.broadcast %1 : vector<3x1xf32> to vector<3x8xf32>
    %4 = vector.broadcast %0 : vector<1x8xf32> to vector<3x8xf32>
    %5 = arith.mulf %3, %4 : vector<3x8xf32>
    %6 = vector.broadcast %2 : vector<3x1xf32> to vector<3x8xf32>
    %7 = arith.addf %5, %6 : vector<3x8xf32>
    %c0_4 = arith.constant 0 : index
    %c0_5 = arith.constant 0 : index
    %8 = vector.load %arg2[%c0_4, %c0_5] : memref<3x8xf32, #tpu.memory_space<vmem>>, vector<3x8xf32>
    tpu.vector_store %arg2[%c0_4, %c0_5], %7 {strides = array<i32>} : memref<3x8xf32, #tpu.memory_space<vmem>>, vector<3x8xf32>,
    return
  }
}

</mosaic_0001>

<bundles_post_ra>
// kernel: tpu_custom_call.1
= control target key start
LH: loop header
LB: loop body
LE: loop exit
PB: predicated region body
PF: predicated region fallthrough
CT: control target
= control target key end

     0   :  { %v75_v1 = vmov 0   ;;  %s102_s0 = inlined_call_operand.vmem [shape: f32[1,8], index: 0, kind: input, shape index: {}]   ;;  %s103_s1 = inlined_call_operand.vmem [shape: f32[3,2], index: 1, kind: input, shape index: {}]   ;;  %s104_s2 = inlined_call_operand.hbm [shape: f32[3,8], index: 2, kind: output, shape index: {}]  }
   0x1   :  { %v13_v0 = vld [vmem:[%s103_s1] sm:$0x7]  ;;  %51 = vset.pattern.permute.xlu0 %v75_v1 }
   0x2   :  { %7 = vsyncpa [#allocation3], 0  ;;  %16 = vperm.xlu0 %51, %v13_v0   ;;  %v76_v2 = vmov 1   ;;  %v47_v4 = vld [vmem:[%s102_s0] ss:$0 sm:$0xff]  ;;  %s77_s13 = smov [#allocation2]  }
   0x3   :  { %s39_s14 = sshll.u32 %s77_s13, 4  ;;  %vm31_vm0 = vcmask 59392   ;;  %s40_s14 = int_to_ptr.vmem [resolvable:$true] %s39_s14 }
   0x4   :  { %s53_s1 = scalar_lea.vmem %s40_s14, 64  ;;  %p58_p1 = scmp.lt.s32.totalorder %s40_s14, %s40_s14 }
   0x5   :  { %p54_p0 = scmp.ne.s32.totalorder %s40_s14, %s53_s1  ;;  %p59_p2 = scmp.lt.s32.totalorder %s53_s1, %s53_s1 }
   0x6   :  { %52 = vset.pattern.permute.xlu0 %v76_v2 }
   0x7   :  { %27 = vperm.xlu0 %52, %v13_v0   ;;  %p60_p3 = por %p59_p2, %p58_p1 }
   0x9   :  { %p61_p4 = pnand %p60_p3, %p54_p0 }
  0x7d   :  { %v17_v3 = vpop.permute.xlu0 %16 }
  0x7e   :  { %v25_v5 = vmul.f32 %v47_v4, %v17_v3 }
  0x82   :  { %v28_v6 = vpop.permute.xlu0 %27 }
  0x83   :  { %v30_v7 = vadd.f32 %v28_v6, %v25_v5 }
  0x85   :  { %32 = vst.msk [vmem:[#allocation2] sm:$0x7] %vm31_vm0, %v30_v7 }
  0x86   :  { %64 = shalt.err (!%p61_p4)
}
  0x87   :  { %42 = dma.vmem_to_hbm [thread:$0]  %s40_s14, 64, %s104_s2, [#allocation3]  }
  0x88   :  { %73 = dma.done.wait [#allocation3], 64  }
  0x89   :  { %74 = vsyncadd [#allocation3], 4294967232 }
  0x8a   :  { %46 = vsyncpa [#allocation3], 1 }

</bundles_post_ra>
